<compile_context>
chip_gen: v5e
topology: v5e:2x2
jax: 0.10.0
libtpu: 0.0.40
codegen_flags: <defaults>
</compile_context>

<pallas_src>
import functools

import jax
import jax.numpy as jnp
import numpy as np
from jax.experimental import pallas as pl
from jax.experimental.pallas import tpu as pltpu


def _vq_kernel(x_ref, et_ref, e2_ref, e_ref,
               quant_ref, idx_ref, psum_ref, psq_ref,
               *, n_total: int):
    """One (TILE_N, D) row-tile of the hard-VQ forward."""
    tile_n = x_ref.shape[0]
    k = e2_ref.shape[-1]
    i = pl.program_id(0)

    x = x_ref[...].astype(jnp.float32)            # (T, D): upcast in VMEM (free)

    # argmin_k ||x - e_k||^2 == argmin_k (||e_k||^2 - 2 x.e_k); the per-row
    # ||x||^2 term is constant w.r.t. k and dropped.  et_ref holds -2 * E^T.
    xe = jnp.dot(x, et_ref[...], preferred_element_type=jnp.float32)   # (T, K)
    dist = xe + e2_ref[...]                                            # (T, K)

    # nearest codebook entry (first-min tie break == torch.argmin)
    col = jax.lax.broadcasted_iota(jnp.int32, dist.shape, 1)
    min_d = jnp.min(dist, axis=1, keepdims=True)
    idx = jnp.min(jnp.where(dist <= min_d, col, k), axis=1, keepdims=True)  # (T,1)

    # Rows of a padded final tile get idx == K -> all-zero one-hot row, so they
    # drop out of psum and of the quantized matmul automatically.
    row = jax.lax.broadcasted_iota(jnp.int32, (tile_n, 1), 0) + i * tile_n
    valid = row < n_total
    idx = jnp.where(valid, idx, k)

    enc = (col == idx).astype(jnp.float32)                              # (T, K)
    q = jnp.dot(enc, e_ref[...], preferred_element_type=jnp.float32)    # (T, D)

    # straight-through: forward value of inputs + (q - inputs).detach() is q
    quant_ref[...] = q.astype(quant_ref.dtype)
    idx_ref[...] = idx

    # per-tile partial reductions; global MSE / perplexity finished in wrapper.
    psum_ref[...] = jnp.sum(enc, axis=0).reshape(1, 1, k)
    diff = q - x
    row_sq = jnp.sum(diff * diff, axis=1, keepdims=True)                # (T, 1)
    # select (not multiply) so garbage/NaN in padded VMEM rows cannot leak in.
    psq_ref[...] = jnp.sum(jnp.where(valid, row_sq, 0.0)).reshape(1, 1, 1)


def _vmem_limit_bytes():
    """Generation-aware scoped-VMEM limit: ~3/4 of physical, capped at 96 MiB.

    v7x (64 MiB physical) -> 48 MiB; v5e/v6e (128 MiB) -> 96 MiB.
    """
    try:
        cap = pltpu.get_tpu_info().vmem_capacity_bytes
    except Exception:  # off-TPU / older jax: assume the smallest (v7x) budget
        cap = 64 * 1024 * 1024
    return int(min(96 * 1024 * 1024, (cap * 3) // 4))


def vq_payam_forward(x, embedding, commitment_cost, *, tile_n=None, interpret=False):
    """x: (..., D) with D == embedding_dim. embedding: (K, D).

    Returns (loss, quantized, perplexity, encodings) with quantized shaped/dtyped
    like x and encodings of shape (N, K) float32, N = x.size // D.
    """
    orig_shape = x.shape
    K, D = embedding.shape
    assert orig_shape[-1] == D, "last dim of inputs must equal embedding_dim"
    N = x.size // D
    flat = x.reshape(N, D)                     # native dtype (no convert pass)

    vmem_limit = _vmem_limit_bytes()
    n_pad8 = max(8, ((N + 7) // 8) * 8)
    if tile_n is None:
        # K-aware tile sizing: double-buffered x/quant/idx I/O plus ~8 live
        # (T, K) f32/i32 intermediates, against ~1/3 of the scoped-VMEM limit.
        itm = np.dtype(flat.dtype).itemsize
        per_row = 2 * D * itm + 2 * D * itm + 2 * 4 + 8 * K * 4
        tile_n = int((vmem_limit // 3) // max(per_row, 1))
        tile_n = max(256, min(8192, tile_n))
        tile_n = min(tile_n, n_pad8)
        tile_n = max(8, (tile_n // 8) * 8)
        # prefer an even tile count so v7x's two TensorCores stay balanced.
        nt = pl.cdiv(N, tile_n)
        if nt > 1 and nt % 2 == 1:
            tile_n = max(8, ((pl.cdiv(N, nt + 1) + 7) // 8) * 8)
    else:
        tile_n = max(8, (min(tile_n, n_pad8) // 8) * 8)
    num_tiles = pl.cdiv(N, tile_n)

    emb = embedding.astype(jnp.float32)
    et_neg2 = (-2.0 * emb).T                      # (D, K): -2 folded in, no in-kernel transpose
    e2 = jnp.sum(emb * emb, axis=1)[None, :]      # (1, K): hoisted off per-tile path

    kernel = functools.partial(_vq_kernel, n_total=N)

    out_shapes = (
        jax.ShapeDtypeStruct((N, D), x.dtype),                 # quantized (flat, native dtype)
        jax.ShapeDtypeStruct((N, 1), jnp.int32),               # nearest-code indices
        jax.ShapeDtypeStruct((num_tiles, 1, K), jnp.float32),  # per-tile sum(one_hot)
        jax.ShapeDtypeStruct((num_tiles, 1, 1), jnp.float32),  # per-tile sum(|q-x|^2)
    )

    quant_flat, idx, psum, psq = pl.pallas_call(
        kernel,
        grid=(num_tiles,),
        in_specs=[
            pl.BlockSpec((tile_n, D), lambda i: (i, 0)),   # x tile
            pl.BlockSpec((D, K), lambda i: (0, 0)),        # -2*E^T (resident)
            pl.BlockSpec((1, K), lambda i: (0, 0)),        # ||E||^2 (resident)
            pl.BlockSpec((K, D), lambda i: (0, 0)),        # E      (resident)
        ],
        out_specs=(
            pl.BlockSpec((tile_n, D), lambda i: (i, 0)),
            pl.BlockSpec((tile_n, 1), lambda i: (i, 0)),
            pl.BlockSpec((1, 1, K), lambda i: (i, 0, 0)),
            pl.BlockSpec((1, 1, 1), lambda i: (i, 0, 0)),
        ),
        out_shape=out_shapes,
        compiler_params=pltpu.CompilerParams(
            dimension_semantics=("parallel",),
            vmem_limit_bytes=vmem_limit,
        ),
        interpret=interpret,
    )(flat, et_neg2, e2, emb)

    # Tiny epilogue on (num_tiles, K) partials: finish global reductions here so
    # the grid axis stays "parallel" (no accumulator, megacore-friendly on v7x).
    mse = jnp.sum(psq) / jnp.float32(N * D)
    loss = (1.0 + commitment_cost) * mse            # q_latent + cc * e_latent (fwd value)
    avg_probs = jnp.sum(psum, axis=(0, 1)) / jnp.float32(N)
    perplexity = jnp.exp(-jnp.sum(avg_probs * jnp.log(avg_probs + 1e-10)))

    # One-hot encodings are only materialized here (cheap XLA one_hot from the
    # int32 indices); the kernel never writes the (N, K) f32 stream to HBM.
    encodings = jax.nn.one_hot(idx[:, 0], K, dtype=jnp.float32)

    quantized = quant_flat.reshape(orig_shape)
    # TODO(synk): detach()/straight-through gradient semantics are forward-only
    # here; a custom VJP would be needed to reproduce PyTorch gradients.
    return loss, quantized, perplexity, encodings


def _reference_forward(x, embedding, commitment_cost):
    """Pure-JAX reference matching the PyTorch forward (for correctness check)."""
    hp = jax.lax.Precision.HIGHEST
    K, D = embedding.shape
    flat = x.reshape(-1, D).astype(jnp.float32)
    dist = (jnp.sum(flat ** 2, axis=1, keepdims=True)
            + jnp.sum(embedding ** 2, axis=1)[None, :]
            - 2.0 * jnp.dot(flat, embedding.T, precision=hp))
    idx = jnp.argmin(dist, axis=1)
    enc = jax.nn.one_hot(idx, K, dtype=jnp.float32)
    q = jnp.dot(enc, embedding, precision=hp)
    mse = jnp.mean((q - flat) ** 2)
    loss = (1.0 + commitment_cost) * mse
    avg = jnp.mean(enc, axis=0)
    perp = jnp.exp(-jnp.sum(avg * jnp.log(avg + 1e-10)))
    return loss, q.reshape(x.shape), perp, enc


def _check(x, embedding, commitment_cost, **kw):
    out = vq_payam_forward(x, embedding, commitment_cost, **kw)
    jax.block_until_ready(out)
    loss, quantized, perplexity, encodings = out
    rl, rq, rp, re = _reference_forward(x, embedding, commitment_cost)
    np.testing.assert_allclose(np.asarray(loss), np.asarray(rl), rtol=1e-4, atol=1e-4)
    np.testing.assert_allclose(np.asarray(quantized), np.asarray(rq), rtol=1e-4, atol=1e-4)
    np.testing.assert_allclose(np.asarray(perplexity), np.asarray(rp), rtol=1e-4, atol=1e-4)
    np.testing.assert_allclose(np.asarray(encodings), np.asarray(re), rtol=0, atol=1e-5)
    assert quantized.shape == x.shape and quantized.dtype == x.dtype
    assert encodings.shape == (x.size // embedding.shape[1], embedding.shape[0])


if __name__ == "__main__":
    num_embeddings = 64     # K
    embedding_dim = 32      # D
    commitment_cost = 0.25

    key = jax.random.PRNGKey(0)
    ke, kx, kx2 = jax.random.split(key, 3)
    # nn.Embedding weight: .uniform_(-0.2, 0.2) then .normal_() -> effectively N(0, 1)
    embedding = jax.random.normal(ke, (num_embeddings, embedding_dim), jnp.float32)
    # channels-last input so .view(-1, embedding_dim) is a plain row flatten
    x = jax.random.normal(kx, (2, 8, 8, embedding_dim), jnp.float32)

    # main case (auto tile size, single tile)
    _check(x, embedding, commitment_cost)

    # multi-tile case with a padded final tile (exercises the masking path)
    x2 = jax.random.normal(kx2, (3, 5, 7, embedding_dim), jnp.float32)  # N = 105
    _check(x2, embedding, commitment_cost, tile_n=64)

    print("KERNEL_OK")
</pallas_src>

<mosaic_0001>
module attributes {stable_mosaic.version = 11 : i64} {
  func.func @_vq_kernel(%arg0: i32, %arg1: memref<128x32xf32, #tpu.memory_space<vmem>>, %arg2: memref<32x64xf32, #tpu.memory_space<vmem>>, %arg3: memref<1x64xf32, #tpu.memory_space<vmem>>, %arg4: memref<64x32xf32, #tpu.memory_space<vmem>>, %arg5: memref<128x32xf32, #tpu.memory_space<vmem>>, %arg6: memref<128x1xi32, #tpu.memory_space<vmem>>, %arg7: memref<1x1x64xf32, #tpu.memory_space<vmem>>, %arg8: memref<1x1x1xf32, #tpu.memory_space<vmem>>) attributes {dimension_semantics = [#tpu.dimension_semantics<parallel>], iteration_bounds = array<i64: 1>, scalar_prefetch = 0 : i64, scratch_operands = 0 : i64, tpu.core_type = #tpu.core_type<tc>, window_params = [{transform_indices = @transform_0, window_bounds = array<i64: 128, 32>}, {pipeline_mode = #tpu.pipeline_mode<synchronous>, transform_indices = @transform_1, window_bounds = array<i64: 32, 64>}, {pipeline_mode = #tpu.pipeline_mode<synchronous>, transform_indices = @transform_2, window_bounds = array<i64: 1, 64>}, {pipeline_mode = #tpu.pipeline_mode<synchronous>, transform_indices = @transform_3, window_bounds = array<i64: 64, 32>}, {transform_indices = @transform_4, window_bounds = array<i64: 128, 32>}, {transform_indices = @transform_5, window_bounds = array<i64: 128, 1>}, {transform_indices = @transform_6, window_bounds = array<i64: 1, 1, 64>}, {transform_indices = @transform_7, window_bounds = array<i64: 1, 1, 1>}]} {
    %c0 = arith.constant 0 : index
    %c0_0 = arith.constant 0 : index
    %0 = vector.load %arg1[%c0, %c0_0] : memref<128x32xf32, #tpu.memory_space<vmem>>, vector<128x32xf32>
    %c0_1 = arith.constant 0 : index
    %c0_2 = arith.constant 0 : index
    %1 = vector.load %arg2[%c0_1, %c0_2] : memref<32x64xf32, #tpu.memory_space<vmem>>, vector<32x64xf32>
    %cst = arith.constant dense<0.000000e+00> : vector<128x64xf32>
    %2 = tpu.matmul %0, %1, %cst {dimension_numbers = #tpu.dot_dimension_numbers<[1], [0], [0], [1], [0, 0, 1, 1], [], []>} : vector<128x32xf32>, vector<32x64xf32>, vector<128x64xf32> -> vector<128x64xf32>
    %c0_3 = arith.constant 0 : index
    %c0_4 = arith.constant 0 : index
    %3 = vector.load %arg3[%c0_3, %c0_4] : memref<1x64xf32, #tpu.memory_space<vmem>>, vector<1x64xf32>
    %4 = vector.broadcast %3 : vector<1x64xf32> to vector<128x64xf32>
    %5 = arith.addf %2, %4 : vector<128x64xf32>
    %6 = tpu.iota {dimensions = array<i32: 1>} : vector<128x64xi32>
    %cst_5 = arith.constant dense<0x7F800000> : vector<128xf32>
    %7 = vector.multi_reduction <minimumf>, %5, %cst_5 [1] : vector<128x64xf32> to vector<128xf32>
    %8 = vector.shape_cast %7 : vector<128xf32> to vector<128x1xf32>
    %9 = vector.broadcast %8 : vector<128x1xf32> to vector<128x64xf32>
    %10 = arith.cmpf ole, %5, %9 : vector<128x64xf32>
    %c64_i32 = arith.constant 64 : i32
    %11 = vector.broadcast %c64_i32 : i32 to vector<128x64xi32>
    %12 = arith.select %10, %6, %11 : vector<128x64xi1>, vector<128x64xi32>
    %cst_6 = arith.constant dense<2147483647> : vector<128xi32>
    %13 = vector.multi_reduction <minsi>, %12, %cst_6 [1] : vector<128x64xi32> to vector<128xi32>
    %14 = vector.shape_cast %13 : vector<128xi32> to vector<128x1xi32>
    %15 = tpu.iota {dimensions = array<i32: 0>} : vector<128x1xi32>
    %c128_i32 = arith.constant 128 : i32
    %16 = arith.muli %arg0, %c128_i32 : i32
    %17 = vector.broadcast %16 : i32 to vector<128x1xi32>
    %18 = arith.addi %15, %17 : vector<128x1xi32>
    %c128_i32_7 = arith.constant 128 : i32
    %19 = vector.broadcast %c128_i32_7 : i32 to vector<128x1xi32>
    %20 = arith.cmpi slt, %18, %19 : vector<128x1xi32>
    %c64_i32_8 = arith.constant 64 : i32
    %21 = vector.broadcast %c64_i32_8 : i32 to vector<128x1xi32>
    %22 = arith.select %20, %14, %21 : vector<128x1xi1>, vector<128x1xi32>
    %23 = vector.broadcast %22 : vector<128x1xi32> to vector<128x64xi32>
    %24 = arith.cmpi eq, %6, %23 : vector<128x64xi32>
    %25 = arith.extui %24 : vector<128x64xi1> to vector<128x64xi32>
    %26 = arith.sitofp %25 : vector<128x64xi32> to vector<128x64xf32>
    %c0_9 = arith.constant 0 : index
    %c0_10 = arith.constant 0 : index
    %27 = vector.load %arg4[%c0_9, %c0_10] : memref<64x32xf32, #tpu.memory_space<vmem>>, vector<64x32xf32>
    %cst_11 = arith.constant dense<0.000000e+00> : vector<128x32xf32>
    %28 = tpu.matmul %26, %27, %cst_11 {dimension_numbers = #tpu.dot_dimension_numbers<[1], [0], [0], [1], [0, 0, 1, 1], [], []>} : vector<128x64xf32>, vector<64x32xf32>, vector<128x32xf32> -> vector<128x32xf32>
    %c0_12 = arith.constant 0 : index
    %c0_13 = arith.constant 0 : index
    %29 = vector.load %arg5[%c0_12, %c0_13] : memref<128x32xf32, #tpu.memory_space<vmem>>, vector<128x32xf32>
    tpu.vector_store %arg5[%c0_12, %c0_13], %28 {strides = array<i32>} : memref<128x32xf32, #tpu.memory_space<vmem>>, vector<128x32xf32>,
    %c0_14 = arith.constant 0 : index
    %c0_15 = arith.constant 0 : index
    %30 = vector.load %arg6[%c0_14, %c0_15] : memref<128x1xi32, #tpu.memory_space<vmem>>, vector<128x1xi32>
    tpu.vector_store %arg6[%c0_14, %c0_15], %22 {strides = array<i32>} : memref<128x1xi32, #tpu.memory_space<vmem>>, vector<128x1xi32>,
    %cst_16 = arith.constant dense<0.000000e+00> : vector<64xf32>
    %31 = vector.multi_reduction <add>, %26, %cst_16 [0] : vector<128x64xf32> to vector<64xf32>
    %32 = vector.shape_cast %31 : vector<64xf32> to vector<1x1x64xf32>
    %c0_17 = arith.constant 0 : index
    %c0_18 = arith.constant 0 : index
    %c0_19 = arith.constant 0 : index
    %33 = vector.load %arg7[%c0_17, %c0_18, %c0_19] : memref<1x1x64xf32, #tpu.memory_space<vmem>>, vector<1x1x64xf32>
    tpu.vector_store %arg7[%c0_17, %c0_18, %c0_19], %32 {strides = array<i32>} : memref<1x1x64xf32, #tpu.memory_space<vmem>>, vector<1x1x64xf32>,
    %34 = arith.subf %28, %0 : vector<128x32xf32>
    %35 = arith.mulf %34, %34 : vector<128x32xf32>
    %cst_20 = arith.constant dense<0.000000e+00> : vector<128xf32>
    %36 = vector.multi_reduction <add>, %35, %cst_20 [1] : vector<128x32xf32> to vector<128xf32>
    %37 = vector.shape_cast %36 : vector<128xf32> to vector<128x1xf32>
    %cst_21 = arith.constant 0.000000e+00 : f32
    %38 = vector.broadcast %cst_21 : f32 to vector<128x1xf32>
    %39 = arith.select %20, %37, %38 : vector<128x1xi1>, vector<128x1xf32>
    %40 = vector.shape_cast %39 : vector<128x1xf32> to vector<1x128x1xf32>
    %cst_22 = arith.constant dense<0.000000e+00> : vector<1xf32>
    %41 = vector.multi_reduction <add>, %40, %cst_22 [1, 2] : vector<1x128x1xf32> to vector<1xf32>
    %42 = vector.shape_cast %41 : vector<1xf32> to vector<1x1x1xf32>
    %43 = vector.extract %42[0, 0, 0] : f32 from vector<1x1x1xf32>
    %44 = vector.broadcast %43 : f32 to vector<1x1x1xf32>
    %c0_23 = arith.constant 0 : index
    %c0_24 = arith.constant 0 : index
    %c0_25 = arith.constant 0 : index
    %45 = vector.load %arg8[%c0_23, %c0_24, %c0_25] : memref<1x1x1xf32, #tpu.memory_space<vmem>>, vector<1x1x1xf32>
    tpu.vector_store %arg8[%c0_23, %c0_24, %c0_25], %44 {strides = array<i32>} : memref<1x1x1xf32, #tpu.memory_space<vmem>>, vector<1x1x1xf32>,
    return
  }
  func.func @transform_0(%arg0: i32) -> (i32, i32) {
    %c0_i32 = arith.constant 0 : i32
    %c0_i32_0 = arith.constant 0 : i32
    return %arg0, %c0_i32 : i32, i32
  }
  func.func @transform_1(%arg0: i32) -> (i32, i32) {
    %c0_i32 = arith.constant 0 : i32
    %c0_i32_0 = arith.constant 0 : i32
    %c0_i32_1 = arith.constant 0 : i32
    return %c0_i32, %c0_i32_0 : i32, i32
  }
  func.func @transform_2(%arg0: i32) -> (i32, i32) {
    %c0_i32 = arith.constant 0 : i32
    %c0_i32_0 = arith.constant 0 : i32
    %c0_i32_1 = arith.constant 0 : i32
    return %c0_i32, %c0_i32_0 : i32, i32
  }
  func.func @transform_3(%arg0: i32) -> (i32, i32) {
    %c0_i32 = arith.constant 0 : i32
    %c0_i32_0 = arith.constant 0 : i32
    %c0_i32_1 = arith.constant 0 : i32
    return %c0_i32, %c0_i32_0 : i32, i32
  }
  func.func @transform_4(%arg0: i32) -> (i32, i32) {
    %c0_i32 = arith.constant 0 : i32
    %c0_i32_0 = arith.constant 0 : i32
    return %arg0, %c0_i32 : i32, i32
  }
  func.func @transform_5(%arg0: i32) -> (i32, i32) {
    %c0_i32 = arith.constant 0 : i32
    %c0_i32_0 = arith.constant 0 : i32
    return %arg0, %c0_i32 : i32, i32
  }
  func.func @transform_6(%arg0: i32) -> (i32, i32, i32) {
    %c0_i32 = arith.constant 0 : i32
    %c0_i32_0 = arith.constant 0 : i32
    %c0_i32_1 = arith.constant 0 : i32
    return %arg0, %c0_i32, %c0_i32_0 : i32, i32, i32
  }
  func.func @transform_7(%arg0: i32) -> (i32, i32, i32) {
    %c0_i32 = arith.constant 0 : i32
    %c0_i32_0 = arith.constant 0 : i32
    %c0_i32_1 = arith.constant 0 : i32
    return %arg0, %c0_i32, %c0_i32_0 : i32, i32, i32
  }
}

</mosaic_0001>

<bundles_post_ra>
// kernel: tpu_custom_call.1
= control target key start
LH: loop header
LB: loop body
LE: loop exit
PB: predicated region body
PF: predicated region fallthrough
CT: control target
= control target key end

     0   :  { %13 = vsyncpa [#allocation3], 0  ;;  %s1853_s0 = inlined_call_operand.vmem [shape: f32[128,32], index: 0, kind: input, shape index: {}]   ;;  %s1854_s1 = inlined_call_operand.vmem [shape: f32[32,64], index: 1, kind: input, shape index: {}]   ;;  %s1855_s2 = inlined_call_operand.vmem [shape: f32[1,64], index: 2, kind: input, shape index: {}]   ;;  %s1856_s3 = inlined_call_operand.vmem [shape: f32[64,32], index: 3, kind: input, shape index: {}]   ;;  %s1857_s4 = inlined_call_operand.vmem [shape: f32[128,32], index: 4, kind: output, shape index: {0}]   ;;  %s1858_s5 = inlined_call_operand.vmem [shape: s32[128,1], index: 5, kind: output, shape index: {1}]   ;;  %s1859_s6 = inlined_call_operand.hbm [shape: f32[1,1,64], index: 6, kind: output, shape index: {2}]   ;;  %s1860_s7 = inlined_call_operand.hbm [shape: f32[1,1,1], index: 7, kind: output, shape index: {3}]  }
   0x1   :  { %v42_v0 = vld [vmem:[%s1854_s1 + $0x18] sm:$0xff]  ;;  %v41_v1 = vld [vmem:[%s1854_s1 + $0x10] sm:$0xff]  ;;  %v40_v2 = vld [vmem:[%s1854_s1 + $0x8] sm:$0xff] }
   0x2   :  { %108 = vmatpush.msra.mxu0 %v42_v0  ;;  %1019 = vmatpush.msra.mxu3 %v42_v0  ;;  %v39_v3 = vld [vmem:[%s1854_s1] sm:$0xff] }
   0x4   :  { %109 = vmatpush.msra.mxu0 %v41_v1  ;;  %1020 = vmatpush.msra.mxu3 %v41_v1 }
   0x5   :  { %14 = vsyncpa [#allocation5], 0  ;;  %v1161_v4 = vld [vmem:[%s1853_s0] sm:$0xff]  ;;  %vm47_vm0 = vcmask 261120   ;;  %v32_v5 = vld [vmem:[%s1853_s0 + $0x48] sm:$0xff]  ;;  %vm163_vm1 = vcmask 523264   ;;  %v161_v63 = vlaneseq }
   0x6   :  { %110 = vmatpush.msra.mxu0 %v40_v2  ;;  %1021 = vmatpush.msra.mxu3 %v40_v2  ;;  %v1172_v6 = vld [vmem:[%s1853_s0 + $0x8] sm:$0xff]  ;;  %v33_v7 = vld [vmem:[%s1853_s0 + $0x50] sm:$0xff]  ;;  %v34_v9 = vld [vmem:[%s1853_s0 + $0x58] sm:$0xff]  ;;  %s942_s19 = sshll.u32 %s1859_s6, 4  ;;  %s1104_s20 = smov [#allocation2]   ;;  %s943_s19 = int_to_ptr.hbm [resolvable:$true] %s942_s19 }
   0x7   :  { %v25_v8 = vld [vmem:[%s1853_s0 + $0x10] sm:$0xff]  ;;  %v26_v10 = vld [vmem:[%s1853_s0 + $0x18] sm:$0xff]  ;;  %v27_v11 = vld [vmem:[%s1853_s0 + $0x20] sm:$0xff]  ;;  %v1291_v0 = vand.u32 127, %v161_v63  ;;  %s1105_s21 = smov [#allocation4]   ;;  %s953_s25 = sshll.u32 %s1860_s7, 4  ;;  %s954_s25 = int_to_ptr.hbm [resolvable:$true] %s953_s25 }
   0x8   :  { %111 = vmatpush.msra.mxu0 %v39_v3  ;;  %1022 = vmatpush.msra.mxu3 %v39_v3  ;;  %v35_v12 = vld [vmem:[%s1853_s0 + $0x60] sm:$0xff]  ;;  %v28_v13 = vld [vmem:[%s1853_s0 + $0x28] sm:$0xff]  ;;  %v29_v15 = vld [vmem:[%s1853_s0 + $0x30] sm:$0xff]  ;;  %s951_s22 = sshll.u32 %s1105_s21, 4  ;;  %s952_s22 = int_to_ptr.vmem [resolvable:$true] %s951_s22 }
   0x9   :  { %971 = vmatmul.msk.f32.vlgmr.msra.gmra.mxu0 %vm47_vm0, %v1161_v4  ;;  %980 = vmatmul.msk.f32.vlgmr.msra.gmra.mxu3 %vm47_vm0, %v32_v5  ;;  %v36_v14 = vld [vmem:[%s1853_s0 + $0x68] sm:$0xff]  ;;  %v30_v16 = vld [vmem:[%s1853_s0 + $0x38] sm:$0xff]  ;;  %v31_v17 = vld [vmem:[%s1853_s0 + $0x40] sm:$0xff] }
   0xa   :  { %v37_v18 = vld [vmem:[%s1853_s0 + $0x70] sm:$0xff]  ;;  %v38_v19 = vld [vmem:[%s1853_s0 + $0x78] sm:$0xff]  ;;  %v1231_v20 = vld [vmem:[%s1855_s2] ss:$0 sm:$0xff] }
  0x11   :  { %972 = vmatmul.msk.f32.gmra.mxu0 %vm47_vm0, %v1172_v6  ;;  %981 = vmatmul.msk.f32.gmra.mxu3 %vm47_vm0, %v33_v7 }
  0x19   :  { %973 = vmatmul.msk.f32.gmra.mxu0 %vm47_vm0, %v25_v8  ;;  %982 = vmatmul.msk.f32.gmra.mxu3 %vm47_vm0, %v34_v9 }
  0x21   :  { %974 = vmatmul.msk.f32.gmra.mxu0 %vm47_vm0, %v26_v10  ;;  %983 = vmatmul.msk.f32.gmra.mxu3 %vm47_vm0, %v35_v12 }
  0x29   :  { %975 = vmatmul.msk.f32.gmra.mxu0 %vm47_vm0, %v27_v11  ;;  %984 = vmatmul.msk.f32.gmra.mxu3 %vm47_vm0, %v36_v14 }
  0x31   :  { %976 = vmatmul.msk.f32.gmra.mxu0 %vm47_vm0, %v28_v13  ;;  %985 = vmatmul.msk.f32.gmra.mxu3 %vm47_vm0, %v37_v18 }
  0x39   :  { %977 = vmatmul.msk.f32.gmra.mxu0 %vm47_vm0, %v29_v15  ;;  %986 = vmatmul.msk.f32.gmra.mxu3 %vm47_vm0, %v38_v19 }
  0x41   :  { %978 = vmatmul.msk.f32.gmra.mxu0 %vm47_vm0, %v30_v16 }
  0x49   :  { %979 = vmatmul.msk.f32.gmra.mxu0 %vm47_vm0, %v31_v17 }
  0x86   :  { %v113_v21 = vpop.f32.mrf.mxu0 }
  0x87   :  { %v114_v22 = vadd.f32 %v1231_v20, %v113_v21 }
  0x89   :  { %v164_v23 = vsel %vm163_vm1, %v114_v22, inf }
  0x8a   :  { %165 = vmin.xlane.f32.xlu0 %v164_v23 }
  0x8c   :  { %v140_v24 = vpop.f32.mrf.mxu3 }
  0x8d   :  { %v1236_v25 = vadd.f32 %v1231_v20, %v140_v24 }
  0x8e   :  { %v116_v26 = vpop.f32.mrf.mxu0 }
  0x8f   :  { %v117_v27 = vadd.f32 %v1231_v20, %v116_v26  ;;  %v191_v28 = vsel %vm163_vm1, %v1236_v25, inf }
  0x90   :  { %192 = vmin.xlane.f32.xlu2 %v191_v28 }
  0x91   :  { %v167_v29 = vsel %vm163_vm1, %v117_v27, inf }
  0x92   :  { %168 = vmin.xlane.f32.xlu0 %v167_v29 }
  0x94   :  { %v143_v30 = vpop.f32.mrf.mxu3 }
  0x95   :  { %v1243_v31 = vadd.f32 %v1231_v20, %v143_v30 }
  0x96   :  { %v119_v32 = vpop.f32.mrf.mxu0 }
  0x97   :  { %v194_v33 = vsel %vm163_vm1, %v1243_v31, inf  ;;  %v120_v53 = vadd.f32 %v1231_v20, %v119_v32 }
  0x99   :  { %v170_v54 = vsel %vm163_vm1, %v120_v53, inf }
  0x9a   :  { %195 = vmin.xlane.f32.xlu0 %v194_v33 }
  0x9c   :  { %v146_v36 = vpop.f32.mrf.mxu3 }
  0x9d   :  { %v1253_v38 = vadd.f32 %v1231_v20, %v146_v36 }
  0x9e   :  { %v122_v34 = vpop.f32.mrf.mxu0 }
  0x9f   :  { %v1248_v35 = vadd.f32 %v1231_v20, %v122_v34  ;;  %v197_v40 = vsel %vm163_vm1, %v1253_v38, inf }
  0xa1   :  { %v173_v37 = vsel %vm163_vm1, %v1248_v35, inf }
  0xa2   :  { %174 = vmin.xlane.f32.xlu2 %v173_v37 }
  0xa4   :  { %v149_v56 = vpop.f32.mrf.mxu3 }
  0xa5   :  { %v1282_v58 = vadd.f32 %v1231_v20, %v149_v56 }
  0xa6   :  { %v125_v39 = vpop.f32.mrf.mxu0 }
  0xa7   :  { %v1277_v55 = vadd.f32 %v1231_v20, %v125_v39  ;;  %v200_v59 = vsel %vm163_vm1, %v1282_v58, inf }
  0xa9   :  { %v176_v57 = vsel %vm163_vm1, %v1277_v55, inf }
  0xaa   :  { %198 = vmin.xlane.f32.xlu2 %v197_v40 }
  0xac   :  { %v152_v60 = vpop.f32.mrf.mxu3 }
  0xad   :  { %v1287_v61 = vadd.f32 %v1231_v20, %v152_v60 }
  0xae   :  { %v128_v41 = vpop.f32.mrf.mxu0 }
  0xaf   :  { %v1258_v42 = vadd.f32 %v1231_v20, %v128_v41  ;;  %v203_v62 = vsel %vm163_vm1, %v1287_v61, inf }
  0xb1   :  { %v179_v43 = vsel %vm163_vm1, %v1258_v42, inf }
  0xb2   :  { %180 = vmin.xlane.f32.xlu0 %v179_v43 }
  0xb4   :  { %v155_v12 = vpop.f32.mrf.mxu3 }
  0xb5   :  { %v1310_v14 = vadd.f32 %v1231_v20, %v155_v12 }
  0xb6   :  { %v131_v44 = vpop.f32.mrf.mxu0 }
  0xb7   :  { %v1263_v45 = vadd.f32 %v1231_v20, %v131_v44  ;;  %v206_v15 = vsel %vm163_vm1, %v1310_v14, inf }
  0xb9   :  { %v182_v46 = vsel %vm163_vm1, %v1263_v45, inf }
  0xba   :  { %183 = vmin.xlane.f32.xlu0 %v182_v46 }
  0xbc   :  { %v158_v16 = vpop.f32.mrf.mxu3 }
  0xbd   :  { %v1315_v17 = vadd.f32 %v1231_v20, %v158_v16 }
  0xbe   :  { %v134_v47 = vpop.f32.mrf.mxu0 }
  0xbf   :  { %v1268_v48 = vadd.f32 %v1231_v20, %v134_v47  ;;  %v209_v18 = vsel %vm163_vm1, %v1315_v17, inf }
  0xc1   :  { %v185_v49 = vsel %vm163_vm1, %v1268_v48, inf }
  0xc2   :  { %186 = vmin.xlane.f32.xlu0 %v185_v49 }
  0xc6   :  { %v137_v50 = vpop.f32.mrf.mxu0 }
  0xc7   :  { %v138_v51 = vadd.f32 %v1231_v20, %v137_v50 }
  0xc9   :  { %v188_v52 = vsel %vm163_vm1, %v138_v51, inf }
  0xca   :  { %189 = vmin.xlane.f32.xlu1 %v188_v52 }
  0xd2   :  { %171 = vmin.xlane.f32.xlu1 %v170_v54 }
  0xda   :  { %177 = vmin.xlane.f32.xlu1 %v176_v57 }
  0xe2   :  { %201 = vmin.xlane.f32.xlu1 %v200_v59 }
  0xea   :  { %204 = vmin.xlane.f32.xlu1 %v203_v62 }
  0xfd   :  { %v166_v1 = vpop.xlane.xlu0 %165 }
  0xfe   :  { %vm212_vm2 = vcmp.le.f32.partialorder %v114_v22, %v166_v1 }
  0xff   :  { %v228_v2 = vsel %vm212_vm2, %v1291_v0, 64 }
 0x100   :  { %v1295_v3 = vsel %vm163_vm1, %v228_v2, 2147483647 }
 0x101   :  { %v246_v5 = vshra.s32 %v1295_v3, 16 }
 0x103   :  { %v1298_v7 = vcvt.s32.f32 %v246_v5  ;;  %v193_v19 = vpop.xlane.xlu2 %192 }
 0x104   :  { %vm221_vm4 = vcmp.le.f32.partialorder %v1236_v25, %v193_v19 }
 0x105   :  { %249 = vmin.xlane.f32.xlu2 %v1298_v7  ;;  %v169_v8 = vpop.xlane.xlu0 %168  ;;  %v237_v26 = vsel %vm221_vm4, %v1291_v0, 64 }
 0x106   :  { %vm213_vm3 = vcmp.le.f32.partialorder %v117_v27, %v169_v8  ;;  %v1329_v29 = vsel %vm163_vm1, %v237_v26, 2147483647 }
 0x107   :  { %v229_v9 = vsel %vm213_vm3, %v1291_v0, 64  ;;  %v381_v32 = vshra.s32 %v1329_v29, 16 }
 0x108   :  { %v1303_v10 = vsel %vm163_vm1, %v229_v9, 2147483647 }
 0x109   :  { %v261_v11 = vshra.s32 %v1303_v10, 16  ;;  %v1342_v41 = vcvt.s32.f32 %v381_v32 }
 0x10b   :  { %v1306_v13 = vcvt.s32.f32 %v261_v11 }
 0x10d   :  { %264 = vmin.xlane.f32.xlu2 %v1306_v13  ;;  %v196_v23 = vpop.xlane.xlu0 %195 }
 0x10e   :  { %vm222_vm8 = vcmp.le.f32.partialorder %v1243_v31, %v196_v23 }
 0x10f   :  { %v238_v37 = vsel %vm222_vm8, %v1291_v0, 64 }
 0x110   :  { %v1350_v43 = vsel %vm163_vm1, %v238_v37, 2147483647 }
 0x111   :  { %v396_v50 = vshra.s32 %v1350_v43, 16 }
 0x113   :  { %v1373_v56 = vcvt.s32.f32 %v396_v50 }
 0x115   :  { %207 = vmin.xlane.f32.xlu2 %v206_v15  ;;  %v175_v27 = vpop.xlane.xlu2 %174 }
 0x116   :  { %vm215_vm6 = vcmp.le.f32.partialorder %v1248_v35, %v175_v27  ;;  %v260_v27 = vand.u32 65535, %v1303_v10 }
 0x117   :  { %v231_v34 = vsel %vm215_vm6, %v1291_v0, 64 }
 0x118   :  { %v1347_v31 = vsel %vm163_vm1, %v231_v34, 2147483647  ;;  %v262_v32 = vcvt.s32.f32 %v260_v27 }
 0x119   :  { %v291_v47 = vshra.s32 %v1347_v31, 16 }
 0x11d   :  { %210 = vmin.xlane.f32.xlu2 %v209_v18  ;;  %v199_v40 = vpop.xlane.xlu2 %198 }
 0x11e   :  { %vm223_vm9 = vcmp.le.f32.partialorder %v1253_v38, %v199_v40  ;;  %v1366_v38 = vcvt.s32.f32 %v291_v47 }
 0x125   :  { %v181_v39 = vpop.xlane.xlu0 %180 }
 0x126   :  { %vm217_vm11 = vcmp.le.f32.partialorder %v1258_v42, %v181_v39 }
 0x13d   :  { %v190_v21 = vpop.xlane.xlu1 %189 }
 0x13e   :  { %vm220_vm5 = vcmp.le.f32.partialorder %v138_v51, %v190_v21  ;;  %v239_v51 = vsel %vm223_vm9, %v1291_v0, 64  ;;  %v245_v21 = vand.u32 65535, %v1295_v3 }
 0x13f   :  { %v236_v22 = vsel %vm220_vm5, %v1291_v0, 64  ;;  %v1371_v42 = vsel %vm163_vm1, %v239_v51, 2147483647 }
 0x140   :  { %v1322_v24 = vsel %vm163_vm1, %v236_v22, 2147483647  ;;  %v411_v60 = vshra.s32 %v1371_v42, 16  ;;  %v247_v23 = vcvt.s32.f32 %v245_v21 }
 0x141   :  { %v366_v20 = vshra.s32 %v1322_v24, 16  ;;  %v365_v10 = vand.u32 65535, %v1322_v24 }
 0x142   :  { %v1387_v2 = vcvt.s32.f32 %v411_v60  ;;  %v605_v60 = vld [vmem:[%s1856_s3 + $0x30] sm:$0xff] }
 0x143   :  { %v1326_v28 = vcvt.s32.f32 %v366_v20 }
 0x145   :  { %369 = vmin.xlane.f32.xlu1 %v1326_v28  ;;  %v172_v25 = vpop.xlane.xlu1 %171 }
 0x146   :  { %vm214_vm7 = vcmp.le.f32.partialorder %v120_v53, %v172_v25  ;;  %v233_v53 = vsel %vm217_vm11, %v1291_v0, 64 }
 0x147   :  { %v230_v30 = vsel %vm214_vm7, %v1291_v0, 64  ;;  %v1376_v57 = vsel %vm163_vm1, %v233_v53, 2147483647 }
 0x148   :  { %v1337_v33 = vsel %vm163_vm1, %v230_v30, 2147483647  ;;  %v321_v62 = vshra.s32 %v1376_v57, 16 }
 0x149   :  { %v276_v36 = vshra.s32 %v1337_v33, 16  ;;  %v275_v24 = vand.u32 65535, %v1337_v33 }
 0x14a   :  { %v1392_v8 = vcvt.s32.f32 %v321_v62  ;;  %v395_v62 = vand.u32 65535, %v1350_v43 }
 0x14b   :  { %v1344_v35 = vcvt.s32.f32 %v276_v36  ;;  %v277_v53 = vcvt.s32.f32 %v275_v24 }
 0x14c   :  { %v397_v43 = vcvt.s32.f32 %v395_v62 }
 0x14d   :  { %384 = vmin.xlane.f32.xlu1 %v1342_v41  ;;  %v178_v44 = vpop.xlane.xlu1 %177  ;;  %279 = vmin.xlane.f32.xlu0 %v1344_v35 }
 0x14e   :  { %vm216_vm10 = vcmp.le.f32.partialorder %v1277_v55, %v178_v44  ;;  %v184_v55 = vpop.xlane.xlu0 %183 }
 0x14f   :  { %v232_v46 = vsel %vm216_vm10, %v1291_v0, 64  ;;  %vm218_vm13 = vcmp.le.f32.partialorder %v1263_v45, %v184_v55 }
 0x150   :  { %v1360_v49 = vsel %vm163_vm1, %v232_v46, 2147483647  ;;  %v234_v1 = vsel %vm218_vm13, %v1291_v0, 64 }
 0x151   :  { %v306_v52 = vshra.s32 %v1360_v49, 16 }
 0x153   :  { %v1368_v54 = vcvt.s32.f32 %v306_v52 }
 0x155   :  { %v202_v59 = vpop.xlane.xlu1 %201  ;;  %294 = vmin.xlane.f32.xlu0 %v1366_v38  ;;  %309 = vmin.xlane.f32.xlu2 %v1368_v54 }
 0x156   :  { %vm224_vm12 = vcmp.le.f32.partialorder %v1282_v58, %v202_v59  ;;  %399 = vmin.xlane.f32.xlu1 %v1373_v56  ;;  %v1395_v58 = vsel %vm163_vm1, %v234_v1, 2147483647  ;;  %v187_v26 = vpop.xlane.xlu0 %186  ;;  %v606_v59 = vld [vmem:[%s1856_s3 + $0x38] sm:$0xff]  ;;  %v603_v1 = vld [vmem:[%s1856_s3 + $0x20] sm:$0xff] }
 0x157   :  { %v240_v63 = vsel %vm224_vm12, %v1291_v0, 64  ;;  %v336_v11 = vshra.s32 %v1395_v58, 16  ;;  %vm219_vm2 = vcmp.le.f32.partialorder %v1268_v48, %v187_v26  ;;  %663 = vmatpush.msra.mxu1 %v606_v59  ;;  %1023 = vmatpush.msra.mxu2 %v606_v59 }
 0x158   :  { %v1390_v5 = vsel %vm163_vm1, %v240_v63, 2147483647  ;;  %v235_v25 = vsel %vm219_vm2, %v1291_v0, 64  ;;  %v604_v63 = vld [vmem:[%s1856_s3 + $0x28] sm:$0xff] }
 0x159   :  { %v426_v45 = vshra.s32 %v1390_v5, 16  ;;  %v1408_v18 = vcvt.s32.f32 %v336_v11  ;;  %v1429_v3 = vsel %vm163_vm1, %v235_v25, 2147483647  ;;  %664 = vmatpush.msra.mxu1 %v605_v60  ;;  %1024 = vmatpush.msra.mxu2 %v605_v60  ;;  %v601_v25 = vld [vmem:[%s1856_s3 + $0x10] sm:$0xff] }
 0x15b   :  { %v1403_v15 = vcvt.s32.f32 %v426_v45  ;;  %665 = vmatpush.msra.mxu1 %v604_v63  ;;  %1025 = vmatpush.msra.mxu2 %v604_v63 }
 0x15d   :  { %v205_v9 = vpop.xlane.xlu1 %204  ;;  %414 = vmin.xlane.f32.xlu0 %v1387_v2  ;;  %666 = vmatpush.msra.mxu1 %v603_v1 }
 0x15e   :  { %vm225_vm14 = vcmp.le.f32.partialorder %v1287_v61, %v205_v9  ;;  %324 = vmin.xlane.f32.xlu1 %v1392_v8  ;;  %1026 = vmatpush.msra.mxu2 %v603_v1 }
 0x15f   :  { %v241_v12 = vsel %vm225_vm14, %v1291_v0, 64 }
 0x160   :  { %v1406_v16 = vsel %vm163_vm1, %v241_v12, 2147483647 }
 0x161   :  { %v441_v61 = vshra.s32 %v1406_v16, 16 }
 0x163   :  { %v1413_v19 = vcvt.s32.f32 %v441_v61  ;;  %v602_v61 = vld [vmem:[%s1856_s3 + $0x18] sm:$0xff] }
 0x164   :  { %667 = vmatpush.msra.mxu1 %v602_v61  ;;  %1027 = vmatpush.msra.mxu2 %v602_v61 }
 0x165   :  { %429 = vmin.xlane.f32.xlu0 %v1403_v15 }
 0x166   :  { %339 = vmin.xlane.f32.xlu1 %v1408_v18  ;;  %668 = vmatpush.msra.mxu1 %v601_v25 }
 0x167   :  { %1028 = vmatpush.msra.mxu2 %v601_v25 }
 0x16d   :  { %444 = vmin.xlane.f32.xlu0 %v1413_v19 }
 0x178   :  { %v1417_v22 = vpop.xlane.xlu2 %249 }
 0x179   :  { %vm251_vm15 = vcmp.eq.f32.partialorder %v1298_v7, %v1417_v22  ;;  %v351_v7 = vshra.s32 %v1429_v3, 16 }
 0x17a   :  { %v252_v20 = vsel %vm251_vm15, %v247_v23, inf  ;;  %v410_v23 = vand.u32 65535, %v1371_v42 }
 0x17b   :  { %253 = vmin.xlane.f32.xlu2 %v252_v20  ;;  %v1432_v36 = vcvt.s32.f32 %v351_v7 }
 0x17c   :  { %v412_v27 = vcvt.s32.f32 %v410_v23 }
 0x180   :  { %v1424_v30 = vpop.xlane.xlu2 %264 }
 0x181   :  { %vm266_vm3 = vcmp.eq.f32.partialorder %v1306_v13, %v1424_v30  ;;  %v367_v13 = vcvt.s32.f32 %v365_v10  ;;  %v335_v10 = vand.u32 65535, %v1395_v58 }
 0x182   :  { %v267_v34 = vsel %vm266_vm3, %v262_v32, inf  ;;  %vm736_vm3 = vcmask 7168  }
 0x183   :  { %268 = vmin.xlane.f32.xlu2 %v267_v34 }
 0x188   :  { %v208_v48 = vpop.xlane.xlu2 %207 }
 0x189   :  { %vm226_vm4 = vcmp.le.f32.partialorder %v1310_v14, %v208_v48  ;;  %v380_v14 = vand.u32 65535, %v1329_v29  ;;  %v599_v48 = vld [vmem:[%s1856_s3] sm:$0xff] }
 0x18a   :  { %v242_v37 = vsel %vm226_vm4, %v1291_v0, 64 }
 0x18b   :  { %354 = vmin.xlane.f32.xlu2 %v1432_v36  ;;  %v1443_v44 = vsel %vm163_vm1, %v242_v37, 2147483647 }
 0x18c   :  { %v456_v47 = vshra.s32 %v1443_v44, 16 }
 0x18e   :  { %v1454_v55 = vcvt.s32.f32 %v456_v47 }
 0x190   :  { %v211_v40 = vpop.xlane.xlu2 %210 }
 0x191   :  { %vm227_vm6 = vcmp.le.f32.partialorder %v1315_v17, %v211_v40  ;;  %v337_v40 = vcvt.s32.f32 %v335_v10 }
 0x192   :  { %v243_v50 = vsel %vm227_vm6, %v1291_v0, 64 }
 0x193   :  { %v1461_v17 = vsel %vm163_vm1, %v243_v50, 2147483647  ;;  %v256_v50 = vcvt.f32.s32 %v1417_v22 }
 0x1b8   :  { %v1438_v39 = vpop.xlane.xlu1 %369 }
 0x1b9   :  { %vm371_vm5 = vcmp.eq.f32.partialorder %v1326_v28, %v1438_v39  ;;  %v382_v28 = vcvt.s32.f32 %v380_v14 }
 0x1ba   :  { %v372_v46 = vsel %vm371_vm5, %v367_v13, inf }
 0x1bb   :  { %373 = vmin.xlane.f32.xlu1 %v372_v46 }
 0x1c0   :  { %v1450_v51 = vpop.xlane.xlu1 %384  ;;  %v1452_v52 = vpop.xlane.xlu0 %279 }
 0x1c1   :  { %vm386_vm7 = vcmp.eq.f32.partialorder %v1342_v41, %v1450_v51  ;;  %vm281_vm8 = vcmp.eq.f32.partialorder %v1344_v35, %v1452_v52  ;;  %v290_v41 = vand.u32 65535, %v1347_v31  ;;  %v471_v35 = vshra.s32 %v1461_v17, 16 }
 0x1c2   :  { %v387_v29 = vsel %vm386_vm7, %v382_v28, inf  ;;  %v282_v33 = vsel %vm281_vm8, %v277_v53, inf  ;;  %v257_v28 = vshll.u32 %v256_v50, 16 }
 0x1c3   :  { %459 = vmin.xlane.f32.xlu1 %v1454_v55  ;;  %388 = vmin.xlane.f32.xlu2 %v387_v29  ;;  %v292_v45 = vcvt.s32.f32 %v290_v41  ;;  %v1483_v11 = vcvt.s32.f32 %v471_v35  ;;  %v271_v29 = vcvt.f32.s32 %v1424_v30  ;;  %v350_v41 = vand.u32 65535, %v1429_v3 }
 0x1c4   :  { %283 = vmin.xlane.f32.xlu0 %v282_v33 }
 0x1c5   :  { %v272_v33 = vshll.u32 %v271_v29, 16 }
 0x1c8   :  { %v1479_v9 = vpop.xlane.xlu0 %294  ;;  %v1494_v26 = vpop.xlane.xlu2 %309 }
 0x1c9   :  { %v1481_v31 = vpop.xlane.xlu1 %399  ;;  %vm296_vm9 = vcmp.eq.f32.partialorder %v1366_v38, %v1479_v9  ;;  %v320_v38 = vand.u32 65535, %v1376_v57  ;;  %vm311_vm11 = vcmp.eq.f32.partialorder %v1368_v54, %v1494_v26  ;;  %v600_v54 = vld [vmem:[%s1856_s3 + $0x8] sm:$0xff]  ;;  %v316_v29 = vcvt.f32.s32 %v1494_v26 }
 0x1ca   :  { %vm401_vm10 = vcmp.eq.f32.partialorder %v1373_v56, %v1481_v31  ;;  %v297_v12 = vsel %vm296_vm9, %v292_v45, inf  ;;  %v305_v56 = vand.u32 65535, %v1360_v49  ;;  %669 = vmatpush.msra.mxu1 %v600_v54  ;;  %1029 = vmatpush.msra.mxu2 %v600_v54  ;;  %v352_v45 = vcvt.s32.f32 %v350_v41 }
 0x1cb   :  { %474 = vmin.xlane.f32.xlu1 %v1483_v11  ;;  %v402_v21 = vsel %vm401_vm10, %v397_v43, inf  ;;  %v322_v42 = vcvt.s32.f32 %v320_v38  ;;  %v376_v43 = vcvt.f32.s32 %v1438_v39  ;;  %v455_v38 = vand.u32 65535, %v1443_v44 }
 0x1cc   :  { %403 = vmin.xlane.f32.xlu2 %v402_v21  ;;  %298 = vmin.xlane.f32.xlu0 %v297_v12  ;;  %v307_v34 = vcvt.s32.f32 %v305_v56  ;;  %v391_v56 = vcvt.f32.s32 %v1450_v51  ;;  %v406_v10 = vcvt.f32.s32 %v1481_v31 }
 0x1cd   :  { %670 = vmatpush.msra.mxu1 %v599_v48  ;;  %1030 = vmatpush.msra.mxu2 %v599_v48  ;;  %v377_v61 = vshll.u32 %v376_v43, 16  ;;  %v457_v25 = vcvt.s32.f32 %v455_v38  ;;  %v470_v48 = vand.u32 65535, %v1461_v17 }
 0x1ce   :  { %v312_v7 = vsel %vm311_vm11, %v307_v34, inf  ;;  %v392_v51 = vshll.u32 %v391_v56, 16 }
 0x1d0   :  { %v1498_v20 = vpop.xlane.xlu0 %414 }
 0x1d1   :  { %v1505_v32 = vpop.xlane.xlu1 %324  ;;  %vm416_vm12 = vcmp.eq.f32.partialorder %v1387_v2, %v1498_v20  ;;  %v425_v2 = vand.u32 65535, %v1390_v5  ;;  %v440_v5 = vand.u32 65535, %v1406_v16  ;;  %v1103_v16 = vmov 0.0  }
 0x1d2   :  { %vm326_vm13 = vcmp.eq.f32.partialorder %v1392_v8, %v1505_v32  ;;  %v417_v49 = vsel %vm416_vm12, %v412_v27, inf }
 0x1d3   :  { %v327_v57 = vsel %vm326_vm13, %v322_v42, inf  ;;  %418 = vmin.xlane.f32.xlu1 %v417_v49  ;;  %v427_v37 = vcvt.s32.f32 %v425_v2  ;;  %v442_v24 = vcvt.s32.f32 %v440_v5  ;;  %v301_v2 = vcvt.f32.s32 %v1479_v9 }
 0x1d4   :  { %328 = vmin.xlane.f32.xlu2 %v327_v57  ;;  %313 = vmin.xlane.f32.xlu0 %v312_v7 }
 0x1d8   :  { %v1519_v8 = vpop.xlane.xlu0 %429 }
 0x1d9   :  { %v1521_v13 = vpop.xlane.xlu1 %339  ;;  %vm431_vm14 = vcmp.eq.f32.partialorder %v1403_v15, %v1519_v8 }
 0x1da   :  { %vm341_vm15 = vcmp.eq.f32.partialorder %v1408_v18, %v1521_v13  ;;  %v432_v46 = vsel %vm431_vm14, %v427_v37, inf  ;;  %v472_v37 = vcvt.s32.f32 %v470_v48 }
 0x1db   :  { %v342_v14 = vsel %vm341_vm15, %v337_v40, inf  ;;  %v302_v40 = vshll.u32 %v301_v2, 16 }
 0x1dc   :  { %343 = vmin.xlane.f32.xlu1 %v342_v14  ;;  %433 = vmin.xlane.f32.xlu0 %v432_v46 }
 0x1e0   :  { %v1528_v58 = vpop.xlane.xlu0 %444 }
 0x1e1   :  { %vm446_vm2 = vcmp.eq.f32.partialorder %v1413_v19, %v1528_v58 }
 0x1e2   :  { %v447_v47 = vsel %vm446_vm2, %v442_v24, inf  ;;  %v407_v24 = vshll.u32 %v406_v10, 16 }
 0x1e3   :  { %448 = vmin.xlane.f32.xlu2 %v447_v47 }
 0x1ee   :  { %v254_v15 = vpop.xlane.xlu2 %253 }
 0x1ef   :  { %v255_v53 = vcvt.f32.s32 %v254_v15 }
 0x1f1   :  { %v258_v18 = vadd.s32 %v257_v28, %v255_v53 }
 0x1f3   :  { %737 = vst.msk [vmem:[%s1858_s5] sm:$0xff] %vm736_vm3, %v258_v18  ;;  %vm551_vm4 = vcmp.eq.s32.totalorder %v1291_v0, %v258_v18  ;;  %v421_v18 = vcvt.f32.s32 %v1498_v20 }
 0x1f4   :  { %v987_v19 = vsel %vm551_vm4, 1.0, %v1103_v16 }
 0x1f5   :  { %1003 = vmatmul.msk.f32.vlgmr.msra.gmra.mxu1 %vm163_vm1, %v987_v19  ;;  %v753_v35 = vsel %vm163_vm1, %v987_v19, 0.0  ;;  %v331_v19 = vcvt.f32.s32 %v1505_v32 }
 0x1f6   :  { %v269_v22 = vpop.xlane.xlu2 %268 }
 0x1f7   :  { %v270_v59 = vcvt.f32.s32 %v269_v22  ;;  %v422_v22 = vshll.u32 %v421_v18, 16 }
 0x1f9   :  { %v273_v60 = vadd.s32 %v272_v33, %v270_v59 }
 0x1fb   :  { %738 = vst.msk [vmem:[%s1858_s5 + $0x8] sm:$0xff] %vm736_vm3, %v273_v60  ;;  %vm552_vm5 = vcmp.eq.s32.totalorder %v1291_v0, %v273_v60 }
 0x1fc   :  { %v988_v30 = vsel %vm552_vm5, 1.0, %v1103_v16 }
 0x1fd   :  { %1004 = vmatmul.msk.f32.gmra.mxu1 %vm163_vm1, %v988_v30  ;;  %v754_v62 = vsel %vm163_vm1, %v988_v30, 0.0  ;;  %v317_v30 = vshll.u32 %v316_v29, 16 }
 0x1fe   :  { %v755_v63 = vadd.f32 %v754_v62, %v753_v35  ;;  %v1551_v1 = vpop.xlane.xlu2 %354  ;;  %v332_v35 = vshll.u32 %v331_v19, 16 }
 0x1ff   :  { %vm356_vm6 = vcmp.eq.f32.partialorder %v1432_v36, %v1551_v1  ;;  %v286_v36 = vcvt.f32.s32 %v1452_v52 }
 0x200   :  { %v357_v3 = vsel %vm356_vm6, %v352_v45, inf }
 0x201   :  { %358 = vmin.xlane.f32.xlu0 %v357_v3  ;;  %v287_v49 = vshll.u32 %v286_v36, 16 }
 0x22e   :  { %v374_v12 = vpop.xlane.xlu1 %373 }
 0x22f   :  { %v375_v21 = vcvt.f32.s32 %v374_v12  ;;  %v436_v12 = vcvt.f32.s32 %v1519_v8 }
 0x231   :  { %v378_v23 = vadd.s32 %v377_v61, %v375_v21  ;;  %v346_v61 = vcvt.f32.s32 %v1521_v13  ;;  %v437_v38 = vshll.u32 %v436_v12, 16 }
 0x233   :  { %745 = vst.msk [vmem:[%s1858_s5 + $0x40] sm:$0xff] %vm736_vm3, %v378_v23  ;;  %vm559_vm7 = vcmp.eq.s32.totalorder %v1291_v0, %v378_v23 }
 0x234   :  { %v1565_v27 = vsel %vm559_vm7, 1.0, %v1103_v16 }
 0x235   :  { %1011 = vmatmul.msk.f32.vlgmr.msra.gmra.mxu2 %vm163_vm1, %v1565_v27 }
 0x236   :  { %v1569_v39 = vpop.xlane.xlu1 %459  ;;  %v389_v44 = vpop.xlane.xlu2 %388 }
 0x237   :  { %v390_v42 = vcvt.f32.s32 %v389_v44  ;;  %v284_v34 = vpop.xlane.xlu0 %283  ;;  %vm461_vm8 = vcmp.eq.f32.partialorder %v1454_v55, %v1569_v39 }
 0x238   :  { %v285_v54 = vcvt.f32.s32 %v284_v34  ;;  %v462_v57 = vsel %vm461_vm8, %v457_v25, inf  ;;  %v347_v25 = vshll.u32 %v346_v61, 16 }
 0x239   :  { %v393_v52 = vadd.s32 %v392_v51, %v390_v42  ;;  %463 = vmin.xlane.f32.xlu1 %v462_v57 }
 0x23a   :  { %v288_v7 = vadd.s32 %v287_v49, %v285_v54 }
 0x23b   :  { %746 = vst.msk [vmem:[%s1858_s5 + $0x48] sm:$0xff] %vm736_vm3, %v393_v52  ;;  %vm560_vm9 = vcmp.eq.s32.totalorder %v1291_v0, %v393_v52  ;;  %v451_v52 = vcvt.f32.s32 %v1528_v58 }
 0x23c   :  { %739 = vst.msk [vmem:[%s1858_s5 + $0x10] sm:$0xff] %vm736_vm3, %v288_v7  ;;  %vm553_vm10 = vcmp.eq.s32.totalorder %v1291_v0, %v288_v7  ;;  %v1587_v55 = vsel %vm560_vm9, 1.0, %v1103_v16 }
 0x23d   :  { %v989_v17 = vsel %vm553_vm10, 1.0, %v1103_v16  ;;  %1012 = vmatmul.msk.f32.gmra.mxu2 %vm163_vm1, %v1587_v55  ;;  %v452_v10 = vshll.u32 %v451_v52, 16 }
 0x23e   :  { %1005 = vmatmul.msk.f32.gmra.mxu1 %vm163_vm1, %v989_v17  ;;  %v756_v9 = vsel %vm163_vm1, %v989_v17, 0.0  ;;  %v1594_v31 = vpop.xlane.xlu1 %474 }
 0x23f   :  { %v757_v46 = vadd.f32 %v756_v9, %v755_v63  ;;  %v404_v14 = vpop.xlane.xlu2 %403  ;;  %v299_v5 = vpop.xlane.xlu0 %298  ;;  %vm476_vm11 = vcmp.eq.f32.partialorder %v1483_v11, %v1594_v31  ;;  %v481_v61 = vcvt.f32.s32 %v1594_v31 }
 0x240   :  { %v405_v47 = vcvt.f32.s32 %v404_v14  ;;  %v300_v50 = vcvt.f32.s32 %v299_v5  ;;  %v477_v15 = vsel %vm476_vm11, %v472_v37, inf }
 0x241   :  { %478 = vmin.xlane.f32.xlu2 %v477_v15 }
 0x242   :  { %v408_v28 = vadd.s32 %v407_v24, %v405_v47  ;;  %v303_v53 = vadd.s32 %v302_v40, %v300_v50 }
 0x244   :  { %747 = vst.msk [vmem:[%s1858_s5 + $0x50] sm:$0xff] %vm736_vm3, %v408_v28  ;;  %vm554_vm12 = vcmp.eq.s32.totalorder %v1291_v0, %v303_v53  ;;  %vm561_vm13 = vcmp.eq.s32.totalorder %v1291_v0, %v408_v28 }
 0x245   :  { %740 = vst.msk [vmem:[%s1858_s5 + $0x18] sm:$0xff] %vm736_vm3, %v303_v53  ;;  %v990_v11 = vsel %vm554_vm12, 1.0, %v1103_v16  ;;  %v1613_v26 = vsel %vm561_vm13, 1.0, %v1103_v16 }
 0x246   :  { %1006 = vmatmul.msk.f32.gmra.mxu1 %vm163_vm1, %v990_v11  ;;  %v758_v20 = vsel %vm163_vm1, %v990_v11, 0.0  ;;  %1013 = vmatmul.msk.f32.gmra.mxu2 %vm163_vm1, %v1613_v26  ;;  %v419_v32 = vpop.xlane.xlu1 %418  ;;  %v768_v11 = vsel %vm163_vm1, %v1565_v27, 0.0 }
 0x247   :  { %v759_v33 = vadd.f32 %v758_v20, %v757_v46  ;;  %v329_v59 = vpop.xlane.xlu2 %328  ;;  %v420_v60 = vcvt.f32.s32 %v419_v32  ;;  %v314_v41 = vpop.xlane.xlu0 %313  ;;  %v361_v46 = vcvt.f32.s32 %v1551_v1 }
 0x248   :  { %v330_v62 = vcvt.f32.s32 %v329_v59  ;;  %v315_v63 = vcvt.f32.s32 %v314_v41 }
 0x249   :  { %v423_v45 = vadd.s32 %v422_v22, %v420_v60  ;;  %v362_v47 = vshll.u32 %v361_v46, 16  ;;  %v770_v22 = vsel %vm163_vm1, %v1587_v55, 0.0  ;;  %v466_v55 = vcvt.f32.s32 %v1569_v39  ;;  %v1039_v46 = vld [vmem:[%s1853_s0 + $0x20] sm:$0xff] }
 0x24a   :  { %v333_v3 = vadd.s32 %v332_v35, %v330_v62  ;;  %v318_v43 = vadd.s32 %v317_v30, %v315_v63 }
 0x24b   :  { %748 = vst.msk [vmem:[%s1858_s5 + $0x58] sm:$0xff] %vm736_vm3, %v423_v45  ;;  %vm562_vm14 = vcmp.eq.s32.totalorder %v1291_v0, %v423_v45 }
 0x24c   :  { %742 = vst.msk [vmem:[%s1858_s5 + $0x28] sm:$0xff] %vm736_vm3, %v333_v3  ;;  %vm555_vm15 = vcmp.eq.s32.totalorder %v1291_v0, %v318_v43  ;;  %v1632_v21 = vsel %vm562_vm14, 1.0, %v1103_v16  ;;  %vm556_vm2 = vcmp.eq.s32.totalorder %v1291_v0, %v333_v3  ;;  %v467_v3 = vshll.u32 %v466_v55, 16 }
 0x24d   :  { %741 = vst.msk [vmem:[%s1858_s5 + $0x20] sm:$0xff] %vm736_vm3, %v318_v43  ;;  %v991_v8 = vsel %vm555_vm15, 1.0, %v1103_v16  ;;  %v992_v13 = vsel %vm556_vm2, 1.0, %v1103_v16  ;;  %v774_v41 = vsel %vm163_vm1, %v1632_v21, 0.0 }
 0x24e   :  { %1007 = vmatmul.msk.f32.gmra.mxu1 %vm163_vm1, %v991_v8  ;;  %v760_v23 = vsel %vm163_vm1, %v991_v8, 0.0  ;;  %1014 = vmatmul.msk.f32.gmra.mxu2 %vm163_vm1, %v1632_v21  ;;  %v762_v34 = vsel %vm163_vm1, %v992_v13, 0.0 }
 0x24f   :  { %v761_v56 = vadd.f32 %v760_v23, %v759_v33  ;;  %v344_v36 = vpop.xlane.xlu1 %343  ;;  %v434_v44 = vpop.xlane.xlu0 %433 }
 0x250   :  { %v345_v51 = vcvt.f32.s32 %v344_v36  ;;  %v435_v42 = vcvt.f32.s32 %v434_v44 }
 0x251   :  { %v763_v49 = vadd.f32 %v762_v34, %v761_v56 }
 0x252   :  { %v348_v54 = vadd.s32 %v347_v25, %v345_v51  ;;  %v438_v57 = vadd.s32 %v437_v38, %v435_v42 }
 0x254   :  { %743 = vst.msk [vmem:[%s1858_s5 + $0x30] sm:$0xff] %vm736_vm3, %v348_v54  ;;  %vm563_vm4 = vcmp.eq.s32.totalorder %v1291_v0, %v438_v57  ;;  %vm557_vm5 = vcmp.eq.s32.totalorder %v1291_v0, %v348_v54 }
 0x255   :  { %749 = vst.msk [vmem:[%s1858_s5 + $0x60] sm:$0xff] %vm736_vm3, %v438_v57  ;;  %v999_v7 = vsel %vm563_vm4, 1.0, %v1103_v16  ;;  %v993_v48 = vsel %vm557_vm5, 1.0, %v1103_v16 }
 0x256   :  { %1008 = vmatmul.msk.f32.gmra.mxu1 %vm163_vm1, %v992_v13  ;;  %1015 = vmatmul.msk.f32.gmra.mxu2 %vm163_vm1, %v999_v7  ;;  %v449_v58 = vpop.xlane.xlu2 %448  ;;  %v764_v2 = vsel %vm163_vm1, %v993_v48, 0.0  ;;  %v776_v35 = vsel %vm163_vm1, %v999_v7, 0.0  ;;  %v482_v13 = vshll.u32 %v481_v61, 16  ;;  %v1038_v7 = vld [vmem:[%s1853_s0 + $0x18] sm:$0xff] }
 0x257   :  { %v450_v17 = vcvt.f32.s32 %v449_v58  ;;  %v765_v9 = vadd.f32 %v764_v2, %v763_v49 }
 0x259   :  { %v453_v37 = vadd.s32 %v452_v10, %v450_v17 }
 0x25b   :  { %750 = vst.msk [vmem:[%s1858_s5 + $0x68] sm:$0xff] %vm736_vm3, %v453_v37  ;;  %vm564_vm6 = vcmp.eq.s32.totalorder %v1291_v0, %v453_v37 }
 0x25c   :  { %v1000_v40 = vsel %vm564_vm6, 1.0, %v1103_v16 }
 0x25d   :  { %v778_v62 = vsel %vm163_vm1, %v1000_v40, 0.0 }
 0x25e   :  { %1009 = vmatmul.msk.f32.gmra.mxu1 %vm163_vm1, %v993_v48  ;;  %1016 = vmatmul.msk.f32.gmra.mxu2 %vm163_vm1, %v1000_v40 }
 0x272   :  { %v672_v14 = vpop.f32.mrf.mxu1 }
 0x273   :  { %720 = vst.msk [vmem:[%s1857_s4] sm:$0xff] %vm47_vm0, %v672_v14  ;;  %v792_v5 = vsub.f32 %v672_v14, %v1161_v4 }
 0x274   :  { %v359_v24 = vpop.xlane.xlu0 %358 }
 0x275   :  { %v808_v50 = vmul.f32 %v792_v5, %v792_v5  ;;  %v360_v15 = vcvt.f32.s32 %v359_v24 }
 0x277   :  { %v363_v28 = vadd.s32 %v362_v47, %v360_v15  ;;  %v824_v53 = vsel %vm47_vm0, %v808_v50, 0.0  ;;  %v1040_v15 = vld [vmem:[%s1853_s0 + $0x28] sm:$0xff] }
 0x278   :  { %825 = vadd.xlane.f32.xlu0 %v824_v53 }
 0x279   :  { %744 = vst.msk [vmem:[%s1858_s5 + $0x38] sm:$0xff] %vm736_vm3, %v363_v28  ;;  %vm558_vm7 = vcmp.eq.s32.totalorder %v1291_v0, %v363_v28 }
 0x27a   :  { %v675_v1 = vpop.f32.mrf.mxu1  ;;  %v994_v18 = vsel %vm558_vm7, 1.0, %v1103_v16 }
 0x27b   :  { %721 = vst.msk [vmem:[%s1857_s4 + $0x8] sm:$0xff] %vm47_vm0, %v675_v1  ;;  %v793_v4 = vsub.f32 %v675_v1, %v1172_v6  ;;  %1010 = vmatmul.msk.f32.gmra.mxu1 %vm163_vm1, %v994_v18  ;;  %v766_v29 = vsel %vm163_vm1, %v994_v18, 0.0  ;;  %v772_v6 = vsel %vm163_vm1, %v1613_v26, 0.0  ;;  %v1041_v1 = vld [vmem:[%s1853_s0 + $0x40] sm:$0xff] }
 0x27c   :  { %v767_v19 = vadd.f32 %v766_v29, %v765_v9 }
 0x27d   :  { %v809_v20 = vmul.f32 %v793_v4, %v793_v4 }
 0x27e   :  { %v769_v32 = vadd.f32 %v768_v11, %v767_v19 }
 0x27f   :  { %v827_v33 = vsel %vm47_vm0, %v809_v20, 0.0  ;;  %v1042_v20 = vld [vmem:[%s1853_s0 + $0x30] sm:$0xff] }
 0x280   :  { %v771_v59 = vadd.f32 %v770_v22, %v769_v32  ;;  %828 = vadd.xlane.f32.xlu1 %v827_v33  ;;  %v1043_v33 = vld [vmem:[%s1853_s0 + $0x48] sm:$0xff] }
 0x282   :  { %v773_v60 = vadd.f32 %v772_v6, %v771_v59  ;;  %v1044_v6 = vld [vmem:[%s1853_s0 + $0x58] sm:$0xff] }
 0x284   :  { %v775_v30 = vadd.f32 %v774_v41, %v773_v60 }
 0x286   :  { %v777_v27 = vadd.f32 %v776_v35, %v775_v30 }
 0x288   :  { %v779_v63 = vadd.f32 %v778_v62, %v777_v27 }
 0x2ac   :  { %v464_v45 = vpop.xlane.xlu1 %463 }
 0x2ad   :  { %v465_v43 = vcvt.f32.s32 %v464_v45 }
 0x2af   :  { %v468_v12 = vadd.s32 %v467_v3, %v465_v43 }
 0x2b1   :  { %751 = vst.msk [vmem:[%s1858_s5 + $0x70] sm:$0xff] %vm736_vm3, %v468_v12  ;;  %vm565_vm8 = vcmp.eq.s32.totalorder %v1291_v0, %v468_v12 }
 0x2b2   :  { %v1001_v26 = vsel %vm565_vm8, 1.0, %v1103_v16 }
 0x2b3   :  { %1017 = vmatmul.msk.f32.gmra.mxu2 %vm163_vm1, %v1001_v26  ;;  %v780_v21 = vsel %vm163_vm1, %v1001_v26, 0.0  ;;  %v1046_v26 = vld [vmem:[%s1853_s0 + $0x38] sm:$0xff] }
 0x2b4   :  { %v781_v39 = vadd.f32 %v780_v21, %v779_v63  ;;  %v479_v8 = vpop.xlane.xlu2 %478  ;;  %v1045_v63 = vld [vmem:[%s1853_s0 + $0x60] sm:$0xff] }
 0x2b5   :  { %v480_v23 = vcvt.f32.s32 %v479_v8  ;;  %v1047_v8 = vld [vmem:[%s1853_s0 + $0x50] sm:$0xff] }
 0x2b7   :  { %v483_v38 = vadd.s32 %v482_v13, %v480_v23 }
 0x2b8   :  { %v696_v56 = vpop.f32.mrf.mxu2 }
 0x2b9   :  { %752 = vst.msk [vmem:[%s1858_s5 + $0x78] sm:$0xff] %vm736_vm3, %v483_v38  ;;  %vm566_vm9 = vcmp.eq.s32.totalorder %v1291_v0, %v483_v38  ;;  %v1037_v0 = vld [vmem:[%s1853_s0 + $0x10] sm:$0xff]  ;;  %v800_v18 = vsub.f32 %v696_v56, %v1041_v1  ;;  %s940_s5 = sshll.u32 %s1104_s20, 4  ;;  %s941_s5 = int_to_ptr.vmem [resolvable:$true] %s940_s5 }
 0x2ba   :  { %728 = vst.msk [vmem:[%s1857_s4 + $0x40] sm:$0xff] %vm47_vm0, %v696_v56  ;;  %v1002_v31 = vsel %vm566_vm9, 1.0, %v1103_v16  ;;  %v1048_v56 = vld [vmem:[%s1853_s0 + $0x68] sm:$0xff] }
 0x2bb   :  { %v678_v36 = vpop.f32.mrf.mxu1  ;;  %1018 = vmatmul.msk.f32.gmra.mxu2 %vm163_vm1, %v1002_v31  ;;  %v782_v44 = vsel %vm163_vm1, %v1002_v31, 0.0  ;;  %vm790_vm1 = vcmask 516096   ;;  %v816_v11 = vmul.f32 %v800_v18, %v800_v18 }
 0x2bc   :  { %722 = vst.msk [vmem:[%s1857_s4 + $0x10] sm:$0xff] %vm47_vm0, %v678_v36  ;;  %v794_v25 = vsub.f32 %v678_v36, %v1037_v0  ;;  %v783_v51 = vadd.f32 %v782_v44, %v781_v39 }
 0x2bd   :  { %v848_v41 = vsel %vm47_vm0, %v816_v11, 0.0 }
 0x2be   :  { %v810_v42 = vmul.f32 %v794_v25, %v794_v25  ;;  %v784_v34 = vrot.slane %v783_v51, 4 }
 0x2c0   :  { %v785_v49 = vadd.f32 %v784_v34, %v783_v51  ;;  %v699_v16 = vpop.f32.mrf.mxu2  ;;  %v830_v54 = vsel %vm47_vm0, %v810_v42, 0.0  ;;  %v1049_v51 = vld [vmem:[%s1853_s0 + $0x70] sm:$0xff] }
 0x2c1   :  { %729 = vst.msk [vmem:[%s1857_s4 + $0x48] sm:$0xff] %vm47_vm0, %v699_v16  ;;  %831 = vadd.xlane.f32.xlu2 %v830_v54  ;;  %v801_v59 = vsub.f32 %v699_v16, %v1043_v33  ;;  %v1050_v54 = vld [vmem:[%s1853_s0 + $0x78] sm:$0xff] }
 0x2c2   :  { %v786_v57 = vrot.slane %v785_v49, 2 }
 0x2c3   :  { %v681_v52 = vpop.f32.mrf.mxu1  ;;  %v817_v27 = vmul.f32 %v801_v59, %v801_v59 }
 0x2c4   :  { %723 = vst.msk [vmem:[%s1857_s4 + $0x18] sm:$0xff] %vm47_vm0, %v681_v52  ;;  %v795_v48 = vsub.f32 %v681_v52, %v1038_v7  ;;  %v787_v58 = vadd.f32 %v786_v57, %v785_v49 }
 0x2c5   :  { %v851_v3 = vsel %vm47_vm0, %v817_v27, 0.0 }
 0x2c6   :  { %v811_v2 = vmul.f32 %v795_v48, %v795_v48  ;;  %v788_v10 = vrot.slane %v787_v58, 1 }
 0x2c8   :  { %v833_v17 = vsel %vm47_vm0, %v811_v2, 0.0  ;;  %v789_v9 = vadd.f32 %v788_v10, %v787_v58 }
 0x2c9   :  { %v702_v37 = vpop.f32.mrf.mxu2  ;;  %834 = vadd.xlane.f32.xlu0 %v833_v17 }
 0x2ca   :  { %730 = vst.msk [vmem:[%s1857_s4 + $0x50] sm:$0xff] %vm47_vm0, %v702_v37  ;;  %v802_v13 = vsub.f32 %v702_v37, %v1047_v8 }
 0x2cb   :  { %v684_v40 = vpop.f32.mrf.mxu1  ;;  %791 = vst.msk [vmem:[#allocation2] sm:$0x1] %vm790_vm1, %v789_v9 }
 0x2cc   :  { %724 = vst.msk [vmem:[%s1857_s4 + $0x20] sm:$0xff] %vm47_vm0, %v684_v40  ;;  %v796_v14 = vsub.f32 %v684_v40, %v1039_v46  ;;  %v818_v38 = vmul.f32 %v802_v13, %v802_v13  ;;  %945 = dma.vmem_to_hbm [thread:$0]  %s941_s5, 16, %s943_s19, [#allocation3]  }
 0x2ce   :  { %v812_v5 = vmul.f32 %v796_v14, %v796_v14  ;;  %v854_v36 = vsel %vm47_vm0, %v818_v38, 0.0 }
 0x2d0   :  { %v836_v24 = vsel %vm47_vm0, %v812_v5, 0.0 }
 0x2d1   :  { %v705_v47 = vpop.f32.mrf.mxu2  ;;  %837 = vadd.xlane.f32.xlu1 %v836_v24 }
 0x2d2   :  { %731 = vst.msk [vmem:[%s1857_s4 + $0x58] sm:$0xff] %vm47_vm0, %v705_v47  ;;  %v803_v60 = vsub.f32 %v705_v47, %v1044_v6 }
 0x2d3   :  { %v687_v50 = vpop.f32.mrf.mxu1 }
 0x2d4   :  { %725 = vst.msk [vmem:[%s1857_s4 + $0x28] sm:$0xff] %vm47_vm0, %v687_v50  ;;  %v797_v28 = vsub.f32 %v687_v50, %v1040_v15  ;;  %v819_v62 = vmul.f32 %v803_v60, %v803_v60 }
 0x2d6   :  { %v813_v53 = vmul.f32 %v797_v28, %v797_v28  ;;  %v857_v45 = vsel %vm47_vm0, %v819_v62, 0.0 }
 0x2d8   :  { %v839_v4 = vsel %vm47_vm0, %v813_v53, 0.0 }
 0x2d9   :  { %840 = vadd.xlane.f32.xlu2 %v839_v4  ;;  %v708_v29 = vpop.f32.mrf.mxu2 }
 0x2da   :  { %732 = vst.msk [vmem:[%s1857_s4 + $0x60] sm:$0xff] %vm47_vm0, %v708_v29  ;;  %v804_v55 = vsub.f32 %v708_v29, %v1045_v63 }
 0x2db   :  { %v690_v19 = vpop.f32.mrf.mxu1 }
 0x2dc   :  { %726 = vst.msk [vmem:[%s1857_s4 + $0x30] sm:$0xff] %vm47_vm0, %v690_v19  ;;  %v798_v32 = vsub.f32 %v690_v19, %v1042_v20  ;;  %v820_v43 = vmul.f32 %v804_v55, %v804_v55 }
 0x2de   :  { %v814_v22 = vmul.f32 %v798_v32, %v798_v32  ;;  %v860_v12 = vsel %vm47_vm0, %v820_v43, 0.0 }
 0x2e0   :  { %v842_v30 = vsel %vm47_vm0, %v814_v22, 0.0 }
 0x2e1   :  { %849 = vadd.xlane.f32.xlu2 %v848_v41  ;;  %843 = vadd.xlane.f32.xlu0 %v842_v30  ;;  %v711_v35 = vpop.f32.mrf.mxu2 }
 0x2e2   :  { %733 = vst.msk [vmem:[%s1857_s4 + $0x68] sm:$0xff] %vm47_vm0, %v711_v35  ;;  %v805_v31 = vsub.f32 %v711_v35, %v1048_v56 }
 0x2e4   :  { %v821_v44 = vmul.f32 %v805_v31, %v805_v31 }
 0x2e6   :  { %v863_v0 = vsel %vm47_vm0, %v821_v44, 0.0 }
 0x2e9   :  { %858 = vadd.xlane.f32.xlu2 %v857_v45  ;;  %852 = vadd.xlane.f32.xlu0 %v851_v3 }
 0x2eb   :  { %v826_v48 = vpop.xlane.xlu0 %825 }
 0x2ec   :  { %v888_v37 = vsel %vm736_vm3, %v826_v48, 0.0 }
 0x2f1   :  { %861 = vadd.xlane.f32.xlu0 %v860_v12 }
 0x2f3   :  { %v829_v58 = vpop.xlane.xlu1 %828 }
 0x2f4   :  { %v889_v17 = vsel %vm736_vm3, %v829_v58, 0.0 }
 0x2f5   :  { %v890_v46 = vadd.f32 %v889_v17, %v888_v37 }
 0x2f8   :  { %v693_v61 = vpop.f32.mrf.mxu1 }
 0x2f9   :  { %727 = vst.msk [vmem:[%s1857_s4 + $0x38] sm:$0xff] %vm47_vm0, %v693_v61  ;;  %v799_v21 = vsub.f32 %v693_v61, %v1046_v26 }
 0x2fb   :  { %v815_v39 = vmul.f32 %v799_v21, %v799_v21 }
 0x2fd   :  { %v845_v23 = vsel %vm47_vm0, %v815_v39, 0.0 }
 0x2fe   :  { %846 = vadd.xlane.f32.xlu1 %v845_v23 }
 0x306   :  { %855 = vadd.xlane.f32.xlu1 %v854_v36 }
 0x30e   :  { %864 = vadd.xlane.f32.xlu1 %v863_v0 }
 0x334   :  { %v832_v2 = vpop.xlane.xlu2 %831 }
 0x335   :  { %v891_v40 = vsel %vm736_vm3, %v832_v2, 0.0 }
 0x336   :  { %v714_v25 = vpop.f32.mrf.mxu2  ;;  %v892_v24 = vadd.f32 %v891_v40, %v890_v46 }
 0x337   :  { %734 = vst.msk [vmem:[%s1857_s4 + $0x70] sm:$0xff] %vm47_vm0, %v714_v25  ;;  %v806_v42 = vsub.f32 %v714_v25, %v1049_v51 }
 0x339   :  { %v822_v34 = vmul.f32 %v806_v42, %v806_v42 }
 0x33b   :  { %v866_v49 = vsel %vm47_vm0, %v822_v34, 0.0 }
 0x33c   :  { %867 = vadd.xlane.f32.xlu2 %v866_v49  ;;  %v835_v10 = vpop.xlane.xlu0 %834 }
 0x33d   :  { %v893_v5 = vsel %vm736_vm3, %v835_v10, 0.0 }
 0x33e   :  { %v717_v16 = vpop.f32.mrf.mxu2  ;;  %v894_v50 = vadd.f32 %v893_v5, %v892_v24 }
 0x33f   :  { %735 = vst.msk [vmem:[%s1857_s4 + $0x78] sm:$0xff] %vm47_vm0, %v717_v16  ;;  %v807_v57 = vsub.f32 %v717_v16, %v1050_v54 }
 0x341   :  { %v823_v52 = vmul.f32 %v807_v57, %v807_v57 }
 0x343   :  { %v869_v7 = vsel %vm47_vm0, %v823_v52, 0.0  ;;  %vm929_vm0 = vcmask 0  }
 0x344   :  { %870 = vadd.xlane.f32.xlu0 %v869_v7  ;;  %v838_v9 = vpop.xlane.xlu1 %837 }
 0x345   :  { %v895_v47 = vsel %vm736_vm3, %v838_v9, 0.0 }
 0x346   :  { %v896_v53 = vadd.f32 %v895_v47, %v894_v50 }
 0x34c   :  { %v841_v14 = vpop.xlane.xlu2 %840 }
 0x34d   :  { %v897_v28 = vsel %vm736_vm3, %v841_v14, 0.0 }
 0x34e   :  { %v898_v4 = vadd.f32 %v897_v28, %v896_v53 }
 0x354   :  { %v844_v15 = vpop.xlane.xlu0 %843  ;;  %v850_v19 = vpop.xlane.xlu2 %849 }
 0x355   :  { %v899_v18 = vsel %vm736_vm3, %v844_v15, 0.0  ;;  %v903_v32 = vsel %vm736_vm3, %v850_v19, 0.0 }
 0x356   :  { %v900_v11 = vadd.f32 %v899_v18, %v898_v4 }
 0x35c   :  { %v853_v22 = vpop.xlane.xlu0 %852  ;;  %v859_v41 = vpop.xlane.xlu2 %858 }
 0x35d   :  { %v905_v6 = vsel %vm736_vm3, %v853_v22, 0.0  ;;  %v909_v27 = vsel %vm736_vm3, %v859_v41, 0.0 }
 0x364   :  { %v862_v62 = vpop.xlane.xlu0 %861 }
 0x365   :  { %v911_v3 = vsel %vm736_vm3, %v862_v62, 0.0 }
 0x371   :  { %v847_v1 = vpop.xlane.xlu1 %846 }
 0x372   :  { %v901_v29 = vsel %vm736_vm3, %v847_v1, 0.0 }
 0x373   :  { %v902_v20 = vadd.f32 %v901_v29, %v900_v11 }
 0x375   :  { %v904_v33 = vadd.f32 %v903_v32, %v902_v20 }
 0x377   :  { %v906_v30 = vadd.f32 %v905_v6, %v904_v33 }
 0x379   :  { %v856_v59 = vpop.xlane.xlu1 %855 }
 0x37a   :  { %v907_v60 = vsel %vm736_vm3, %v856_v59, 0.0 }
 0x37b   :  { %v908_v35 = vadd.f32 %v907_v60, %v906_v30 }
 0x37d   :  { %v910_v63 = vadd.f32 %v909_v27, %v908_v35 }
 0x37f   :  { %v912_v12 = vadd.f32 %v911_v3, %v910_v63 }
 0x381   :  { %v865_v55 = vpop.xlane.xlu1 %864 }
 0x382   :  { %v913_v43 = vsel %vm736_vm3, %v865_v55, 0.0 }
 0x383   :  { %v914_v26 = vadd.f32 %v913_v43, %v912_v12 }
 0x3af   :  { %v868_v45 = vpop.xlane.xlu2 %867 }
 0x3b0   :  { %v915_v61 = vsel %vm736_vm3, %v868_v45, 0.0 }
 0x3b1   :  { %v916_v21 = vadd.f32 %v915_v61, %v914_v26 }
 0x3b7   :  { %v871_v39 = vpop.xlane.xlu0 %870 }
 0x3b8   :  { %v917_v8 = vsel %vm736_vm3, %v871_v39, 0.0 }
 0x3b9   :  { %v918_v13 = vadd.f32 %v917_v8, %v916_v21 }
 0x3bb   :  { %919 = vadd.xlane.f32.xlu1 %v918_v13 }
 0x42e   :  { %v920_v23 = vpop.xlane.xlu1 %919 }
 0x42f   :  { %v921_v38 = vrot.slane %v920_v23, 4 }
 0x431   :  { %v922_v56 = vadd.f32 %v921_v38, %v920_v23 }
 0x433   :  { %v923_v31 = vrot.slane %v922_v56, 2 }
 0x435   :  { %v924_v36 = vadd.f32 %v923_v31, %v922_v56 }
 0x437   :  { %v925_v44 = vrot.slane %v924_v36, 1 }
 0x439   :  { %v926_v0 = vadd.f32 %v925_v44, %v924_v36 }
 0x43b   :  { %1031 = vpush %v926_v0 }
 0x46c   :  { %s1032_s6 = spop %1031 }
 0x46d   :  { %v928_v25 = vstv %s1032_s6 }
 0x46e   :  { %930 = vst.msk [vmem:[#allocation4] sm:$0x1] %vm929_vm0, %v928_v25 }
 0x46f   :  { %956 = dma.vmem_to_hbm [thread:$0]  %s952_s22, 16, %s954_s25, [#allocation5]  }
 0x470   :  { %1099 = dma.done.wait [#allocation3], 16  }
 0x471   :  { %1100 = vsyncadd [#allocation3], 4294967280 }
 0x472   :  { %1101 = dma.done.wait [#allocation5], 16  }
 0x473   :  { %1102 = vsyncadd [#allocation5], 4294967280 }
 0x474   :  { %969 = vsyncpa [#allocation3], 1 }
 0x475   :  { %970 = vsyncpa [#allocation5], 1 }

</bundles_post_ra>
